<compile_context>
chip_gen: v5e
topology: v5e:2x2
jax: 0.10.0
libtpu: 0.0.40
codegen_flags: <defaults>
</compile_context>

<pallas_src>
import functools
import math

import jax
import jax.numpy as jnp
from jax.experimental import pallas as pl
from jax.experimental.pallas import tpu as pltpu

LN_EPS = 1e-12  # BERT LayerNorm eps
VMEM_LIMIT = 48 * 1024 * 1024  # explicit scoped-VMEM budget (< v7x 64 MiB physical)


# ----------------------------------------------------------------------------
# helpers
# ----------------------------------------------------------------------------
def _pick_tile(dim, target, gran):
    """Largest tile <= target that is a multiple of `gran` and divides `dim`;
    falls back to the full dim (single block) for small / awkward sizes."""
    if dim <= target:
        return dim
    t = (target // gran) * gran
    while t >= gran:
        if dim % t == 0:
            return t
        t -= gran
    return dim


def _gelu_f32(y):
    # tanh-approx GELU: runs on the EUP (tanh) instead of a long VALU polynomial.
    # TODO(synk): HF BertIntermediate default is exact erf-GELU; tanh approx gives a
    # small systematic deviation (kept for EUP throughput / lowering robustness).
    c = jnp.float32(0.7978845608028654)  # sqrt(2/pi)
    return jnp.float32(0.5) * y * (jnp.float32(1.0)
                                   + jnp.tanh(c * (y + jnp.float32(0.044715) * y * y * y)))


def _activate(y, activation):
    if activation == "gelu":
        return _gelu_f32(y)
    if activation == "tanh":
        return jnp.tanh(y)
    return y


# ----------------------------------------------------------------------------
# Kernel 1: tiled dense  y = x @ W + b  (+ optional tanh / gelu activation)
#   grid = (M/tm, N/tn, K/tk), f32 accumulator in VMEM, bf16 MXU operands.
# ----------------------------------------------------------------------------
def _dense_kernel(x_ref, w_ref, b_ref, o_ref, acc_ref, *, activation, n_k):
    k = pl.program_id(2)

    @pl.when(k == 0)
    def _():
        acc_ref[...] = jnp.zeros_like(acc_ref)

    acc_ref[...] += jnp.dot(x_ref[...].astype(jnp.bfloat16),
                            w_ref[...].astype(jnp.bfloat16),
                            preferred_element_type=jnp.float32)

    @pl.when(k == n_k - 1)
    def _():
        y = acc_ref[...] + b_ref[...].astype(jnp.float32)
        y = _activate(y, activation)
        o_ref[...] = y.astype(o_ref.dtype)


def dense(x, w, b, activation="none", out_dtype=jnp.bfloat16):
    M, K = x.shape
    N = w.shape[1]
    tm = _pick_tile(M, 1024, 8)     # large row tile -> fewer full weight passes
    tn = _pick_tile(N, 512, 128)
    tk = _pick_tile(K, 512, 128)
    n_k = K // tk
    return pl.pallas_call(
        functools.partial(_dense_kernel, activation=activation, n_k=n_k),
        grid=(M // tm, N // tn, n_k),
        in_specs=[
            pl.BlockSpec((tm, tk), lambda i, j, k: (i, k)),
            pl.BlockSpec((tk, tn), lambda i, j, k: (k, j)),
            pl.BlockSpec((1, tn), lambda i, j, k: (0, j)),
        ],
        out_specs=pl.BlockSpec((tm, tn), lambda i, j, k: (i, j)),
        out_shape=jax.ShapeDtypeStruct((M, N), out_dtype),
        scratch_shapes=[pltpu.VMEM((tm, tn), jnp.float32)],
        compiler_params=pltpu.CompilerParams(
            dimension_semantics=("parallel", "parallel", "arbitrary"),
            vmem_limit_bytes=VMEM_LIMIT),
    )(x, w, b.reshape(1, N))


# ----------------------------------------------------------------------------
# Kernel 2: tiled dense + residual add + LayerNorm epilogue (fused)
#   y = LN((x @ W + b) + res) ; full N (= hidden) kept per row tile for the
#   reduction, K tiled as the ("arbitrary") reduction axis.
# ----------------------------------------------------------------------------
def _dense_ln_kernel(x_ref, w_ref, b_ref, res_ref, g_ref, be_ref, o_ref, acc_ref, *, n_k):
    k = pl.program_id(1)

    @pl.when(k == 0)
    def _():
        acc_ref[...] = jnp.zeros_like(acc_ref)

    acc_ref[...] += jnp.dot(x_ref[...].astype(jnp.bfloat16),
                            w_ref[...].astype(jnp.bfloat16),
                            preferred_element_type=jnp.float32)

    @pl.when(k == n_k - 1)
    def _():
        y = acc_ref[...] + b_ref[...].astype(jnp.float32) + res_ref[...].astype(jnp.float32)
        mu = jnp.mean(y, axis=-1, keepdims=True)
        d = y - mu
        var = jnp.mean(d * d, axis=-1, keepdims=True)
        inv = jax.lax.rsqrt(var + jnp.float32(LN_EPS))
        o_ref[...] = (d * inv * g_ref[...] + be_ref[...]).astype(o_ref.dtype)


def dense_ln(x, w, b, res, gamma, beta):
    M, K = x.shape
    N = w.shape[1]
    tm = _pick_tile(M, 1024, 8)
    tk = _pick_tile(K, 512, 128)
    n_k = K // tk
    return pl.pallas_call(
        functools.partial(_dense_ln_kernel, n_k=n_k),
        grid=(M // tm, n_k),
        in_specs=[
            pl.BlockSpec((tm, tk), lambda i, k: (i, k)),
            pl.BlockSpec((tk, N), lambda i, k: (k, 0)),
            pl.BlockSpec((1, N), lambda i, k: (0, 0)),
            pl.BlockSpec((tm, N), lambda i, k: (i, 0)),
            pl.BlockSpec((1, N), lambda i, k: (0, 0)),
            pl.BlockSpec((1, N), lambda i, k: (0, 0)),
        ],
        out_specs=pl.BlockSpec((tm, N), lambda i, k: (i, 0)),
        out_shape=jax.ShapeDtypeStruct((M, N), jnp.bfloat16),
        scratch_shapes=[pltpu.VMEM((tm, N), jnp.float32)],
        compiler_params=pltpu.CompilerParams(
            dimension_semantics=("parallel", "arbitrary"),
            vmem_limit_bytes=VMEM_LIMIT),
    )(x, w, b.reshape(1, N), res, gamma.reshape(1, N), beta.reshape(1, N))


# ----------------------------------------------------------------------------
# Kernel 3: fused FFN  y = LN(gelu(x @ Wi + bi) @ Wo + bo + x)
#   grid tiles the intermediate dim I; inside each grid step the GELU'd
#   intermediate is produced / consumed in small (tm, tc) chunks via an
#   unrolled fori_loop so it never grows beyond a bounded VMEM footprint
#   (and never touches HBM).
# ----------------------------------------------------------------------------
def _ffn_kernel(x_ref, wi_ref, bi_ref, wo_ref, bo_ref, g_ref, be_ref, o_ref, acc_ref,
                *, n_j, tc, n_c):
    j = pl.program_id(1)

    @pl.when(j == 0)
    def _():
        acc_ref[...] = jnp.zeros_like(acc_ref)

    x = x_ref[...].astype(jnp.bfloat16)

    def chunk(c, carry):
        off = pl.multiple_of(c * tc, tc)
        inter = jnp.dot(x, wi_ref[:, pl.ds(off, tc)],
                        preferred_element_type=jnp.float32)
        inter = inter + bi_ref[:, pl.ds(off, tc)].astype(jnp.float32)
        inter = _gelu_f32(inter)
        acc_ref[...] += jnp.dot(inter.astype(jnp.bfloat16),
                                wo_ref[pl.ds(off, tc), :],
                                preferred_element_type=jnp.float32)
        return carry

    jax.lax.fori_loop(0, n_c, chunk, 0, unroll=True)

    @pl.when(j == n_j - 1)
    def _():
        y = acc_ref[...] + bo_ref[...].astype(jnp.float32) + x_ref[...].astype(jnp.float32)
        mu = jnp.mean(y, axis=-1, keepdims=True)
        d = y - mu
        var = jnp.mean(d * d, axis=-1, keepdims=True)
        inv = jax.lax.rsqrt(var + jnp.float32(LN_EPS))
        o_ref[...] = (d * inv * g_ref[...] + be_ref[...]).astype(o_ref.dtype)


def ffn(x, wi, bi, wo, bo, gamma, beta):
    M, H = x.shape
    I = wi.shape[1]
    tm = _pick_tile(M, 1024, 8)
    ti = _pick_tile(I, 512, 128)
    tc = _pick_tile(ti, 256, 128)   # in-kernel chunk of the intermediate
    n_j = I // ti
    n_c = ti // tc
    return pl.pallas_call(
        functools.partial(_ffn_kernel, n_j=n_j, tc=tc, n_c=n_c),
        grid=(M // tm, n_j),
        in_specs=[
            pl.BlockSpec((tm, H), lambda i, j: (i, 0)),
            pl.BlockSpec((H, ti), lambda i, j: (0, j)),
            pl.BlockSpec((1, ti), lambda i, j: (0, j)),
            pl.BlockSpec((ti, H), lambda i, j: (j, 0)),
            pl.BlockSpec((1, H), lambda i, j: (0, 0)),
            pl.BlockSpec((1, H), lambda i, j: (0, 0)),
            pl.BlockSpec((1, H), lambda i, j: (0, 0)),
        ],
        out_specs=pl.BlockSpec((tm, H), lambda i, j: (i, 0)),
        out_shape=jax.ShapeDtypeStruct((M, H), jnp.bfloat16),
        scratch_shapes=[pltpu.VMEM((tm, H), jnp.float32)],
        compiler_params=pltpu.CompilerParams(
            dimension_semantics=("parallel", "arbitrary"),
            vmem_limit_bytes=VMEM_LIMIT),
    )(x, wi, bi.reshape(1, I), wo, bo.reshape(1, H),
      gamma.reshape(1, H), beta.reshape(1, H))


# ----------------------------------------------------------------------------
# Kernel 4: fused QKV-projection + self-attention.
#   grid = (B, S//tq).  At the first query tile of each batch element the full
#   (S, 3H) QKV block is computed on the MXU into a persistent VMEM scratch
#   (weights stay resident; no (M,3H) HBM round trip).  Each grid step then
#   computes a (tq, S) score tile per head and writes ONE lane-dense (tq, H)
#   output block (per-head results are concatenated before the store).
# ----------------------------------------------------------------------------
def _attention_kernel(x_ref, w_ref, b_ref, m_ref, o_ref, qkv_ref, *, nh, dh, tq, scale):
    H = nh * dh
    qi = pl.program_id(1)

    @pl.when(qi == 0)
    def _():
        # project this batch element's full sequence once; reused by all query tiles
        qkv = jnp.dot(x_ref[0], w_ref[...], preferred_element_type=jnp.float32)
        qkv_ref[...] = (qkv + b_ref[...].astype(jnp.float32)).astype(jnp.bfloat16)

    m = m_ref[0].astype(jnp.float32)          # (1, S) additive mask, broadcast over rows
    row0 = pl.multiple_of(qi * tq, tq)

    # TODO(synk): per-head Q/K/V slices sit at dh-lane offsets (lane-sparse loads) and the
    # QK^T contraction depth is only dh; a head-lane-aligned packing / flash-style KV axis
    # would recover the remaining MXU headroom for very long sequences.
    outs = []
    for h in range(nh):
        lo = h * dh
        q = qkv_ref[pl.ds(row0, tq), lo:lo + dh]                    # (tq, dh) bf16
        k = qkv_ref[:, H + lo:H + lo + dh]                          # (S, dh)  bf16
        v = qkv_ref[:, 2 * H + lo:2 * H + lo + dh]                  # (S, dh)  bf16
        s = jax.lax.dot_general(q, k, (((1,), (1,)), ((), ())),
                                preferred_element_type=jnp.float32) * jnp.float32(scale)
        s = s + m
        mx = jnp.max(s, axis=-1, keepdims=True)
        p = jnp.exp(s - mx)
        p = p * pl.reciprocal(jnp.sum(p, axis=-1, keepdims=True), approx=True)
        outs.append(jnp.dot(p.astype(jnp.bfloat16), v, preferred_element_type=jnp.float32))

    # single lane-dense store of the full hidden width
    o_ref[0] = jnp.concatenate(outs, axis=-1).astype(o_ref.dtype)


def attention(h_bsh, w_qkv, b_qkv, add_mask, nh, dh):
    B, S, H = h_bsh.shape
    tq = _pick_tile(S, 256, 8)
    n_q = S // tq
    return pl.pallas_call(
        functools.partial(_attention_kernel, nh=nh, dh=dh, tq=tq,
                          scale=1.0 / math.sqrt(dh)),
        grid=(B, n_q),
        in_specs=[
            pl.BlockSpec((1, S, H), lambda b, q: (b, 0, 0)),        # hidden states (resident per b)
            pl.BlockSpec((H, 3 * H), lambda b, q: (0, 0)),          # fused QKV weight (resident)
            pl.BlockSpec((1, 3 * H), lambda b, q: (0, 0)),
            pl.BlockSpec((1, 1, S), lambda b, q: (b, 0, 0)),
        ],
        out_specs=pl.BlockSpec((1, tq, H), lambda b, q: (b, q, 0)),
        out_shape=jax.ShapeDtypeStruct((B, S, H), jnp.bfloat16),
        scratch_shapes=[pltpu.VMEM((S, 3 * H), jnp.bfloat16)],      # per-batch QKV, VMEM-resident
        compiler_params=pltpu.CompilerParams(
            dimension_semantics=("parallel", "arbitrary"),
            vmem_limit_bytes=VMEM_LIMIT),
    )(h_bsh, w_qkv, b_qkv.reshape(1, 3 * H), add_mask)


# ----------------------------------------------------------------------------
# Kernel 5: row-tiled LayerNorm (embeddings only; encoder LNs are fused above)
# ----------------------------------------------------------------------------
def _layernorm_kernel(x_ref, g_ref, b_ref, o_ref):
    y = x_ref[...].astype(jnp.float32)
    mu = jnp.mean(y, axis=-1, keepdims=True)
    d = y - mu
    var = jnp.mean(d * d, axis=-1, keepdims=True)
    inv = jax.lax.rsqrt(var + jnp.float32(LN_EPS))
    o_ref[...] = (d * inv * g_ref[...] + b_ref[...]).astype(o_ref.dtype)


def layernorm(x, gamma, beta):
    M, H = x.shape
    tm = _pick_tile(M, 1024, 8)
    return pl.pallas_call(
        _layernorm_kernel,
        grid=(M // tm,),
        in_specs=[pl.BlockSpec((tm, H), lambda i: (i, 0)),
                  pl.BlockSpec((1, H), lambda i: (0, 0)),
                  pl.BlockSpec((1, H), lambda i: (0, 0))],
        out_specs=pl.BlockSpec((tm, H), lambda i: (i, 0)),
        out_shape=jax.ShapeDtypeStruct((M, H), jnp.bfloat16),
        compiler_params=pltpu.CompilerParams(
            dimension_semantics=("parallel",),
            vmem_limit_bytes=VMEM_LIMIT),
    )(x, gamma.reshape(1, H), beta.reshape(1, H))


# ----------------------------------------------------------------------------
# Parameters (deterministic synthetic init; shapes mirror a tiny BertModel)
#   matmul weights in bf16, biases / LN params in f32, QKV weights pre-fused,
#   final linear padded to a lane-dense (multiple of 128) output width.
#   TODO(synk): on v7x, fp8 weights (per-channel scales) could halve weight HBM bytes
#   and double MXU rate; gated behind an accuracy check, not applied here.
# ----------------------------------------------------------------------------
def init_params(key, cfg):
    H, I, L = cfg["hidden"], cfg["inter"], cfg["layers"]
    outdim = cfg["outdim"]
    out_pad = ((outdim + 127) // 128) * 128

    def nrm32(k, shape):
        return jax.random.normal(k, shape, jnp.float32) * 0.02

    def nrm16(k, shape):
        return nrm32(k, shape).astype(jnp.bfloat16)

    keys = iter(jax.random.split(key, 5 + 6 * L))

    lin_w = nrm32(next(keys), (H, outdim))
    lin_w_pad = jnp.zeros((H, out_pad), jnp.float32).at[:, :outdim].set(lin_w)

    params = {
        "word_emb": nrm32(next(keys), (cfg["vocab"], H)),
        "pos_emb": nrm32(next(keys), (cfg["max_pos"], H)),
        "type_emb": nrm32(next(keys), (cfg["type_vocab"], H)),
        "emb_ln_g": jnp.ones((H,), jnp.float32),
        "emb_ln_b": jnp.zeros((H,), jnp.float32),
        "pool_w": nrm16(next(keys), (H, H)),
        "pool_b": jnp.zeros((H,), jnp.float32),
        "lin_w_pad": lin_w_pad.astype(jnp.bfloat16),
        "lin_b_pad": jnp.zeros((out_pad,), jnp.float32),
        "layers": [],
    }
    for _ in range(L):
        wq = nrm16(next(keys), (H, H))
        wk = nrm16(next(keys), (H, H))
        wv = nrm16(next(keys), (H, H))
        params["layers"].append({
            "w_qkv": jnp.concatenate([wq, wk, wv], axis=1),   # (H, 3H) bf16
            "b_qkv": jnp.zeros((3 * H,), jnp.float32),
            "wo": nrm16(next(keys), (H, H)), "bo": jnp.zeros((H,), jnp.float32),
            "ln1_g": jnp.ones((H,), jnp.float32), "ln1_b": jnp.zeros((H,), jnp.float32),
            "wi": nrm16(next(keys), (H, I)), "bi": jnp.zeros((I,), jnp.float32),
            "wo2": nrm16(next(keys), (I, H)), "bo2": jnp.zeros((H,), jnp.float32),
            "ln2_g": jnp.ones((H,), jnp.float32), "ln2_b": jnp.zeros((H,), jnp.float32),
        })
    return params


# ----------------------------------------------------------------------------
# Forward pass of BertEncoder4Hybrid: BERT(input_ids, mask) -> linear projection
# returns (hstates, pooled_output), mirroring (linear(seq_out),) + encoder_outputs[1:]
# ----------------------------------------------------------------------------
def bert_encoder4hybrid_forward(params, input_ids, attention_mask, cfg):
    B, S = input_ids.shape
    H = cfg["hidden"]
    nh = cfg["heads"]
    dh = H // nh
    M = B * S

    # Embeddings (gather lookups are glue, kept in plain JAX). token_type_ids == 0.
    we = jnp.take(params["word_emb"], input_ids, axis=0)                 # (B,S,H)
    pe = params["pos_emb"][:S][None]                                     # (1,S,H)
    te = params["type_emb"][0][None, None]                               # (1,1,H)
    emb = (we + pe + te).reshape(M, H)
    h = layernorm(emb, params["emb_ln_g"], params["emb_ln_b"])           # (M,H) bf16

    # Additive attention mask: 0 where attended, -10000 where masked (HF BERT convention).
    add_mask = ((1.0 - attention_mask.astype(jnp.float32)) * -10000.0)[:, None, :]  # (B,1,S)

    for layer in params["layers"]:
        # --- self attention: QKV projection fused into the attention kernel ---
        ctx = attention(h.reshape(B, S, H), layer["w_qkv"], layer["b_qkv"],
                        add_mask, nh, dh)                                # (B, S, H) bf16
        # --- output projection + residual + LN1 fused ---
        h = dense_ln(ctx.reshape(M, H), layer["wo"], layer["bo"],
                     h, layer["ln1_g"], layer["ln1_b"])                  # (M, H) bf16
        # --- feed forward (wi + GELU + wo2 + residual + LN2 fused, intermediate in VMEM) ---
        h = ffn(h, layer["wi"], layer["bi"], layer["wo2"], layer["bo2"],
                layer["ln2_g"], layer["ln2_b"])                          # (M, H) bf16

    seq_out = h.reshape(B, S, H)                                         # last_hidden_state (bf16)
    cls = seq_out[:, 0, :]                                               # (B, H)
    pooled = dense(cls, params["pool_w"], params["pool_b"],
                   activation="tanh", out_dtype=jnp.float32)             # (B, H) f32

    # lane-dense (padded-to-128) final projection, sliced back to outdim
    hpad = dense(h, params["lin_w_pad"], params["lin_b_pad"], out_dtype=jnp.float32)
    hstates = hpad[:, :cfg["outdim"]].reshape(B, S, cfg["outdim"])
    # encoder_outputs = (hstates,) + (pooled_output,)
    return hstates, pooled


# ----------------------------------------------------------------------------
if __name__ == "__main__":
    cfg = dict(vocab=100, hidden=32, heads=4, inter=64, layers=2,
               max_pos=16, type_vocab=2, outdim=48)
    key = jax.random.PRNGKey(0)
    pkey, dkey = jax.random.split(key)
    params = init_params(pkey, cfg)

    B, S = 2, 8
    input_ids = jax.random.randint(dkey, (B, S), 0, cfg["vocab"], dtype=jnp.int32)
    attention_mask = jnp.ones((B, S), jnp.float32)

    hstates, pooled = bert_encoder4hybrid_forward(params, input_ids, attention_mask, cfg)
    jax.block_until_ready((hstates, pooled))

    assert hstates.shape == (B, S, cfg["outdim"]) and hstates.dtype == jnp.float32
    assert pooled.shape == (B, cfg["hidden"]) and pooled.dtype == jnp.float32
    assert bool(jnp.all(jnp.isfinite(hstates))) and bool(jnp.all(jnp.isfinite(pooled)))
    print("KERNEL_OK")
</pallas_src>

<mosaic_0001>
module attributes {stable_mosaic.version = 11 : i64} {
  func.func @_layernorm_kernel(%arg0: i32, %arg1: memref<16x32xf32, #tpu.memory_space<vmem>>, %arg2: memref<1x32xf32, #tpu.memory_space<vmem>>, %arg3: memref<1x32xf32, #tpu.memory_space<vmem>>, %arg4: memref<16x32xbf16, #tpu.memory_space<vmem>>) attributes {dimension_semantics = [#tpu.dimension_semantics<parallel>], iteration_bounds = array<i64: 1>, scalar_prefetch = 0 : i64, scratch_operands = 0 : i64, tpu.core_type = #tpu.core_type<tc>, window_params = [{transform_indices = @transform_0, window_bounds = array<i64: 16, 32>}, {pipeline_mode = #tpu.pipeline_mode<synchronous>, transform_indices = @transform_1, window_bounds = array<i64: 1, 32>}, {pipeline_mode = #tpu.pipeline_mode<synchronous>, transform_indices = @transform_2, window_bounds = array<i64: 1, 32>}, {transform_indices = @transform_3, window_bounds = array<i64: 16, 32>}]} {
    %c0 = arith.constant 0 : index
    %c0_0 = arith.constant 0 : index
    %0 = vector.load %arg1[%c0, %c0_0] : memref<16x32xf32, #tpu.memory_space<vmem>>, vector<16x32xf32>
    %cst = arith.constant dense<0.000000e+00> : vector<16xf32>
    %1 = vector.multi_reduction <add>, %0, %cst [1] : vector<16x32xf32> to vector<16xf32>
    %2 = vector.shape_cast %1 : vector<16xf32> to vector<16x1xf32>
    %cst_1 = arith.constant 3.200000e+01 : f32
    %3 = vector.broadcast %cst_1 : f32 to vector<16x1xf32>
    %4 = arith.divf %2, %3 : vector<16x1xf32>
    %5 = vector.broadcast %4 : vector<16x1xf32> to vector<16x32xf32>
    %6 = arith.subf %0, %5 : vector<16x32xf32>
    %7 = arith.mulf %6, %6 : vector<16x32xf32>
    %cst_2 = arith.constant dense<0.000000e+00> : vector<16xf32>
    %8 = vector.multi_reduction <add>, %7, %cst_2 [1] : vector<16x32xf32> to vector<16xf32>
    %9 = vector.shape_cast %8 : vector<16xf32> to vector<16x1xf32>
    %cst_3 = arith.constant 3.200000e+01 : f32
    %10 = vector.broadcast %cst_3 : f32 to vector<16x1xf32>
    %11 = arith.divf %9, %10 : vector<16x1xf32>
    %cst_4 = arith.constant 9.99999996E-13 : f32
    %12 = vector.broadcast %cst_4 : f32 to vector<16x1xf32>
    %13 = arith.addf %11, %12 : vector<16x1xf32>
    %14 = math.rsqrt %13 : vector<16x1xf32>
    %15 = vector.broadcast %14 : vector<16x1xf32> to vector<16x32xf32>
    %16 = arith.mulf %6, %15 : vector<16x32xf32>
    %c0_5 = arith.constant 0 : index
    %c0_6 = arith.constant 0 : index
    %17 = vector.load %arg2[%c0_5, %c0_6] : memref<1x32xf32, #tpu.memory_space<vmem>>, vector<1x32xf32>
    %18 = vector.broadcast %17 : vector<1x32xf32> to vector<16x32xf32>
    %19 = arith.mulf %16, %18 : vector<16x32xf32>
    %c0_7 = arith.constant 0 : index
    %c0_8 = arith.constant 0 : index
    %20 = vector.load %arg3[%c0_7, %c0_8] : memref<1x32xf32, #tpu.memory_space<vmem>>, vector<1x32xf32>
    %21 = vector.broadcast %20 : vector<1x32xf32> to vector<16x32xf32>
    %22 = arith.addf %19, %21 : vector<16x32xf32>
    %23 = arith.truncf %22 : vector<16x32xf32> to vector<16x32xbf16>
    %c0_9 = arith.constant 0 : index
    %c0_10 = arith.constant 0 : index
    %24 = vector.load %arg4[%c0_9, %c0_10] : memref<16x32xbf16, #tpu.memory_space<vmem>>, vector<16x32xbf16>
    tpu.vector_store %arg4[%c0_9, %c0_10], %23 {strides = array<i32>} : memref<16x32xbf16, #tpu.memory_space<vmem>>, vector<16x32xbf16>,
    return
  }
  func.func @transform_0(%arg0: i32) -> (i32, i32) {
    %c0_i32 = arith.constant 0 : i32
    %c0_i32_0 = arith.constant 0 : i32
    return %arg0, %c0_i32 : i32, i32
  }
  func.func @transform_1(%arg0: i32) -> (i32, i32) {
    %c0_i32 = arith.constant 0 : i32
    %c0_i32_0 = arith.constant 0 : i32
    %c0_i32_1 = arith.constant 0 : i32
    return %c0_i32, %c0_i32_0 : i32, i32
  }
  func.func @transform_2(%arg0: i32) -> (i32, i32) {
    %c0_i32 = arith.constant 0 : i32
    %c0_i32_0 = arith.constant 0 : i32
    %c0_i32_1 = arith.constant 0 : i32
    return %c0_i32, %c0_i32_0 : i32, i32
  }
  func.func @transform_3(%arg0: i32) -> (i32, i32) {
    %c0_i32 = arith.constant 0 : i32
    %c0_i32_0 = arith.constant 0 : i32
    return %arg0, %c0_i32 : i32, i32
  }
}

</mosaic_0001>

<bundles_post_ra>
// kernel: tpu_custom_call.1
= control target key start
LH: loop header
LB: loop body
LE: loop exit
PB: predicated region body
PF: predicated region fallthrough
CT: control target
= control target key end

     0   :  { %8 = vsyncpa [#allocation3], 0  ;;  %s274_s0 = inlined_call_operand.hbm [shape: f32[16,32], index: 0, kind: input, shape index: {}]   ;;  %s275_s1 = inlined_call_operand.hbm [shape: f32[1,32], index: 1, kind: input, shape index: {}]   ;;  %s276_s2 = inlined_call_operand.vmem [shape: f32[1,32], index: 2, kind: input, shape index: {}]   ;;  %s277_s3 = inlined_call_operand.hbm [shape: bf16[16,32], index: 3, kind: output, shape index: {}]  }
   0x1   :  { %9 = vsyncpa [#allocation6], 0 }
   0x2   :  { %10 = vsyncpa [#allocation4], 0  ;;  %s15_s14 = sshll.u32 %s274_s0, 4  ;;  %s230_s15 = smov [#allocation2]   ;;  %s16_s14 = int_to_ptr.hbm [resolvable:$true] %s15_s14 }
   0x3   :  { %s17_s16 = sshll.u32 %s230_s15, 4  ;;  %s29_s19 = sshll.u32 %s275_s1, 4  ;;  %s18_s16 = int_to_ptr.vmem [resolvable:$true] %s17_s16  ;;  %s30_s19 = int_to_ptr.hbm [resolvable:$true] %s29_s19 }
   0x4   :  { %s231_s20 = smov 128   ;;  %s232_s21 = smov 8  }
   0x5   :  { %23 = dma.hbm_to_vmem [thread:$0]  %s16_s14, 256, %s18_s16, [#allocation3], %s231_s20, %s231_s20, %s232_s21  }
   0x6   :  { %s233_s22 = smov [#allocation5]  }
   0x7   :  { %s31_s23 = sshll.u32 %s233_s22, 4  ;;  %s32_s23 = int_to_ptr.vmem [resolvable:$true] %s31_s23 }
   0x8   :  { %34 = dma.hbm_to_vmem [thread:$0]  %s30_s19, 16, %s32_s23, [#allocation6]  }
   0x9   :  { %224 = dma.done.wait [#allocation3], 256  }
   0xa   :  { %225 = vsyncadd [#allocation3], 4294967040 }
   0xb   :  { %226 = dma.done.wait [#allocation6], 16  }
   0xc   :  { %227 = vsyncadd [#allocation6], 4294967280  ;;  %vm47_vm0 = vcmask 261120   ;;  %v45_v0 = vld [vmem:[#allocation2] sm:$0xff]  ;;  %v46_v2 = vld [vmem:[#allocation2 + $0x8] sm:$0xff]  ;;  %v234_v4 = vmov 32.0  }
   0xd   :  { %v48_v1 = vsel %vm47_vm0, %v45_v0, 0.0  ;;  %v51_v3 = vsel %vm47_vm0, %v46_v2, 0.0  ;;  %146 = vrcp.f32 %v234_v4  ;;  %v144_v35 = vld [vmem:[#allocation5] ss:$0 sm:$0xff]  ;;  %v145_v38 = vld [vmem:[%s276_s2] ss:$0 sm:$0xff] }
   0xe   :  { %49 = vadd.xlane.f32.xlu0 %v48_v1  ;;  %vm113_vm7 = vcmask 257024   ;;  %s235_s24 = smov [#allocation7]   ;;  %s122_s2 = sshll.u32 %s277_s3, 4  ;;  %s123_s2 = int_to_ptr.hbm [resolvable:$true] %s122_s2 }
   0xf   :  { %s120_s25 = sshll.u32 %s235_s24, 4  ;;  %s236_s28 = smov 64   ;;  %s121_s25 = int_to_ptr.vmem [resolvable:$true] %s120_s25 }
  0x10   :  { %s237_s29 = smov 4  }
  0x13   :  { %v147_v5 = vpop.eup %146 }
  0x14   :  { %v55_v6 = vmul.f32 32.0, %v147_v5  ;;  %vm59_vm1 = vweird.f32 %v147_v5 }
  0x16   :  { %52 = vadd.xlane.f32.xlu0 %v51_v3  ;;  %v56_v7 = vsub.f32 1.0, %v55_v6 }
  0x18   :  { %v57_v8 = vmul.f32 %v147_v5, %v56_v7 }
  0x1a   :  { %v58_v9 = vadd.f32 %v147_v5, %v57_v8 }
  0x1c   :  { %v60_v10 = vsel %vm59_vm1, %v147_v5, %v58_v9 }
  0x81   :  { %v50_v11 = vpop.xlane.xlu0 %49 }
  0x82   :  { %v61_v12 = vmul.f32 %v60_v10, %v50_v11 }
  0x84   :  { %v63_v13 = vsub.f32 %v45_v0, %v61_v12 }
  0x86   :  { %v65_v14 = vmul.f32 %v63_v13, %v63_v13 }
  0x88   :  { %v67_v15 = vsel %vm47_vm0, %v65_v14, 0.0 }
  0x89   :  { %68 = vadd.xlane.f32.xlu1 %v67_v15  ;;  %v53_v16 = vpop.xlane.xlu0 %52 }
  0x8a   :  { %v62_v17 = vmul.f32 %v60_v10, %v53_v16 }
  0x8c   :  { %v64_v18 = vsub.f32 %v46_v2, %v62_v17 }
  0x8e   :  { %v66_v19 = vmul.f32 %v64_v18, %v64_v18 }
  0x90   :  { %v70_v20 = vsel %vm47_vm0, %v66_v19, 0.0 }
  0x91   :  { %71 = vadd.xlane.f32.xlu1 %v70_v20 }
  0xfc   :  { %v69_v21 = vpop.xlane.xlu1 %68 }
  0xfd   :  { %v73_v22 = vmul.f32 %v69_v21, %v60_v10 }
  0xff   :  { %v75_v23 = vadd.f32 1e-12, %v73_v22 }
 0x101   :  { %148 = vrsqrt.f32 %v75_v23  ;;  %vm83_vm3 = vweird.f32 %v75_v23 }
 0x104   :  { %v72_v24 = vpop.xlane.xlu1 %71 }
 0x105   :  { %v74_v25 = vmul.f32 %v72_v24, %v60_v10 }
 0x107   :  { %v149_v26 = vpop.eup %148  ;;  %v76_v27 = vadd.f32 1e-12, %v74_v25 }
 0x108   :  { %v78_v28 = vmul.f32 %v149_v26, %v75_v23  ;;  %vm84_vm2 = vweird.f32 %v149_v26 }
 0x109   :  { %150 = vrsqrt.f32 %v76_v27  ;;  %vm85_vm4 = vmor %vm83_vm3, %vm84_vm2  ;;  %vm93_vm6 = vweird.f32 %v76_v27 }
 0x10a   :  { %v79_v29 = vmul.f32 %v149_v26, %v78_v28 }
 0x10c   :  { %v80_v30 = vmul.f32 0.5, %v79_v29 }
 0x10e   :  { %v81_v31 = vsub.f32 1.5, %v80_v30 }
 0x10f   :  { %v151_v32 = vpop.eup %150 }
 0x110   :  { %v82_v33 = vmul.f32 %v149_v26, %v81_v31  ;;  %v88_v34 = vmul.f32 %v151_v32, %v76_v27  ;;  %vm94_vm5 = vweird.f32 %v151_v32 }
 0x111   :  { %vm95_vm8 = vmor %vm93_vm6, %vm94_vm5 }
 0x112   :  { %v86_v36 = vsel %vm85_vm4, %v149_v26, %v82_v33  ;;  %v89_v37 = vmul.f32 %v151_v32, %v88_v34 }
 0x113   :  { %v97_v39 = vmul.f32 %v86_v36, %v63_v13 }
 0x114   :  { %v90_v40 = vmul.f32 0.5, %v89_v37 }
 0x115   :  { %v103_v41 = vmul.f32 %v144_v35, %v97_v39 }
 0x116   :  { %v91_v42 = vsub.f32 1.5, %v90_v40 }
 0x117   :  { %v109_v43 = vadd.f32 %v145_v38, %v103_v41 }
 0x118   :  { %v92_v44 = vmul.f32 %v151_v32, %v91_v42 }
 0x119   :  { %v111_v45 = vpack.c.bf16 %v109_v43, %v109_v43 }
 0x11a   :  { %v96_v46 = vsel %vm95_vm8, %v151_v32, %v92_v44 }
 0x11b   :  { %v98_v47 = vmul.f32 %v96_v46, %v64_v18  ;;  %114 = vst.msk [vmem:[#allocation7] sm:$0xf] %vm113_vm7, %v111_v45 }
 0x11d   :  { %v104_v48 = vmul.f32 %v144_v35, %v98_v47 }
 0x11f   :  { %v110_v49 = vadd.f32 %v145_v38, %v104_v48 }
 0x121   :  { %v112_v50 = vpack.c.bf16 %v110_v49, %v110_v49 }
 0x123   :  { %115 = vst.msk [vmem:[#allocation7 + $0x4] sm:$0xf] %vm113_vm7, %v112_v50 }
 0x124   :  { %128 = dma.vmem_to_hbm [thread:$0]  %s121_s25, 128, %s123_s2, [#allocation4], %s236_s28, %s236_s28, %s237_s29  }
 0x125   :  { %228 = dma.done.wait [#allocation4], 128  }
 0x126   :  { %229 = vsyncadd [#allocation4], 4294967168 }
 0x127   :  { %133 = vsyncpa [#allocation3], 1 }
 0x128   :  { %134 = vsyncpa [#allocation6], 1 }
 0x129   :  { %135 = vsyncpa [#allocation4], 1 }

</bundles_post_ra>
